<compile_context>
chip_gen: v5e
topology: v5e:2x2
jax: 0.10.0
libtpu: 0.0.40
codegen_flags: <defaults>
</compile_context>

<pallas_src>
import functools

import jax
import jax.numpy as jnp
from jax.experimental import pallas as pl
from jax.experimental.pallas import tpu as pltpu


def _round_down(v, m):
    return (v // m) * m


def _round_up(v, m):
    return ((v + m - 1) // m) * m


def _sqdiff_sum_kernel(x_ref, y_ref, o_ref):
    # Path A: whole batch resident in the block; reduce over sublanes (axis 0).
    d = x_ref[...].astype(jnp.float32) - y_ref[...].astype(jnp.float32)
    o_ref[...] = jnp.sum(d * d, axis=0, keepdims=True).astype(o_ref.dtype)


def _sqdiff_sum_acc_kernel(x_ref, y_ref, o_ref, acc_ref, *, b_total, tb):
    # Path B: batch tiled along grid axis 1 (reduction, "arbitrary"); f32 acc.
    k = pl.program_id(1)

    @pl.when(k == 0)
    def _():
        acc_ref[...] = jnp.zeros_like(acc_ref)

    d = x_ref[...].astype(jnp.float32) - y_ref[...].astype(jnp.float32)
    if b_total % tb != 0:
        # Ragged final batch block: zero out rows >= b_total before squaring.
        rows = k * tb + jax.lax.broadcasted_iota(jnp.int32, d.shape, 0)
        d = jnp.where(rows < b_total, d, 0.0)
    acc_ref[...] += jnp.sum(d * d, axis=0, keepdims=True)

    @pl.when(k == pl.num_programs(1) - 1)
    def _():
        o_ref[...] = acc_ref[...].astype(o_ref.dtype)


def custom_loss(x, y, *, block_bytes=2 << 20):
    """sum((x - y)**2, axis=0) computed with a Pallas TPU kernel."""
    assert x.shape == y.shape, "x and y must have the same shape"
    B = x.shape[0]
    rest_shape = x.shape[1:]
    N = 1
    for s in rest_shape:
        N *= s
    if B == 0 or N == 0:
        return jnp.zeros(rest_shape, x.dtype)

    x2 = x.reshape(B, N)
    y2 = y.reshape(B, N)
    item = jnp.dtype(x.dtype).itemsize

    # ---------------- tiling selection ----------------
    # Path A keeps the full batch in each block; acceptable as long as that
    # still leaves a reasonably wide lane tile.
    tn_full = _round_down(block_bytes // max(1, B * item), 128)
    use_path_a = (B < 8) or (tn_full >= 512) or (tn_full >= _round_up(N, 128))

    if use_path_a:
        tn = max(128, tn_full)
        if tn >= N:
            tn = N  # single, full-extent lane block (always a legal block dim)
        grid = (pl.cdiv(N, tn),)
        rows_per_block = B
        kernel = _sqdiff_sum_kernel
        in_specs = [
            pl.BlockSpec((B, tn), lambda j: (0, j)),
            pl.BlockSpec((B, tn), lambda j: (0, j)),
        ]
        out_spec = pl.BlockSpec((1, tn), lambda j: (0, j))
        scratch_shapes = []
        dims = ("parallel",)
    else:
        # Path B: tile the batch (multiple of 8 sublanes) to keep tn wide.
        tb = min(_round_up(B, 8), 512)
        tb = max(8, min(tb, _round_down(block_bytes // (128 * item), 8)))
        tn = max(128, _round_down(block_bytes // (tb * item), 128))
        if tn >= N:
            tn = N
        grid = (pl.cdiv(N, tn), pl.cdiv(B, tb))
        rows_per_block = tb
        kernel = functools.partial(_sqdiff_sum_acc_kernel, b_total=B, tb=tb)
        in_specs = [
            pl.BlockSpec((tb, tn), lambda j, k: (k, j)),
            pl.BlockSpec((tb, tn), lambda j, k: (k, j)),
        ]
        out_spec = pl.BlockSpec((1, tn), lambda j, k: (0, j))
        scratch_shapes = [pltpu.VMEM((1, tn), jnp.float32)]
        dims = ("parallel", "arbitrary")

    # VMEM budget: 2 inputs x 2 buffers x block, double-buffered output, acc.
    vmem_needed = (
        2 * 2 * rows_per_block * tn * item  # input double buffers
        + 2 * tn * item                     # output double buffer
        + 4 * tn                            # f32 accumulator (path B)
    )
    vmem_limit = min(max(int(vmem_needed * 1.5) + (4 << 20), 32 << 20), 48 << 20)

    out = pl.pallas_call(
        kernel,
        out_shape=jax.ShapeDtypeStruct((1, N), x.dtype),
        grid_spec=pltpu.PrefetchScalarGridSpec(
            num_scalar_prefetch=0,
            grid=grid,
            in_specs=in_specs,
            out_specs=out_spec,
            scratch_shapes=scratch_shapes,
        ),
        compiler_params=pltpu.CompilerParams(
            dimension_semantics=dims,
            vmem_limit_bytes=vmem_limit,
        ),
    )(x2, y2)

    return out[0].reshape(rest_shape)


if __name__ == "__main__":
    key = jax.random.PRNGKey(0)
    kx, ky, ka, kb = jax.random.split(key, 4)

    # Small NCHW shapes consistent with the module's forward.
    x = jax.random.normal(kx, (2, 4, 16, 16), dtype=jnp.float32)
    y = jax.random.normal(ky, (2, 4, 16, 16), dtype=jnp.float32)

    out = jax.jit(custom_loss)(x, y)
    out = jax.block_until_ready(out)

    ref = jnp.sum((x - y) ** 2, axis=0)
    assert out.shape == ref.shape
    assert jnp.allclose(out, ref, atol=1e-5, rtol=1e-5)

    # Exercise the batch-tiled accumulator path (path B) with a tiny block
    # budget so both code paths are validated on-device.
    xb = jax.random.normal(ka, (24, 8, 8, 8), dtype=jnp.float32)
    yb = jax.random.normal(kb, (24, 8, 8, 8), dtype=jnp.float32)
    out_b = jax.block_until_ready(custom_loss(xb, yb, block_bytes=8192))
    ref_b = jnp.sum((xb - yb) ** 2, axis=0)
    assert out_b.shape == ref_b.shape
    assert jnp.allclose(out_b, ref_b, atol=1e-4, rtol=1e-5)

    print("KERNEL_OK")
</pallas_src>

<mosaic_0001>
module attributes {stable_mosaic.version = 11 : i64} {
  func.func @_sqdiff_sum_kernel(%arg0: i32, %arg1: memref<2x1024xf32, #tpu.memory_space<vmem>>, %arg2: memref<2x1024xf32, #tpu.memory_space<vmem>>, %arg3: memref<1x1024xf32, #tpu.memory_space<vmem>>) attributes {dimension_semantics = [#tpu.dimension_semantics<parallel>], iteration_bounds = array<i64: 1>, scalar_prefetch = 0 : i64, scratch_operands = 0 : i64, tpu.core_type = #tpu.core_type<tc>, window_params = [{transform_indices = @transform_0, window_bounds = array<i64: 2, 1024>}, {transform_indices = @transform_1, window_bounds = array<i64: 2, 1024>}, {transform_indices = @transform_2, window_bounds = array<i64: 1, 1024>}]} {
    %c0 = arith.constant 0 : index
    %c0_0 = arith.constant 0 : index
    %0 = vector.load %arg1[%c0, %c0_0] : memref<2x1024xf32, #tpu.memory_space<vmem>>, vector<2x1024xf32>
    %c0_1 = arith.constant 0 : index
    %c0_2 = arith.constant 0 : index
    %1 = vector.load %arg2[%c0_1, %c0_2] : memref<2x1024xf32, #tpu.memory_space<vmem>>, vector<2x1024xf32>
    %2 = arith.subf %0, %1 : vector<2x1024xf32>
    %3 = arith.mulf %2, %2 : vector<2x1024xf32>
    %cst = arith.constant dense<0.000000e+00> : vector<1024xf32>
    %4 = vector.multi_reduction <add>, %3, %cst [0] : vector<2x1024xf32> to vector<1024xf32>
    %5 = vector.shape_cast %4 : vector<1024xf32> to vector<1x1024xf32>
    %c0_3 = arith.constant 0 : index
    %c0_4 = arith.constant 0 : index
    %6 = vector.load %arg3[%c0_3, %c0_4] : memref<1x1024xf32, #tpu.memory_space<vmem>>, vector<1x1024xf32>
    tpu.vector_store %arg3[%c0_3, %c0_4], %5 {strides = array<i32>} : memref<1x1024xf32, #tpu.memory_space<vmem>>, vector<1x1024xf32>,
    return
  }
  func.func @transform_0(%arg0: i32) -> (i32, i32) {
    %c0_i32 = arith.constant 0 : i32
    %c0_i32_0 = arith.constant 0 : i32
    return %c0_i32, %arg0 : i32, i32
  }
  func.func @transform_1(%arg0: i32) -> (i32, i32) {
    %c0_i32 = arith.constant 0 : i32
    %c0_i32_0 = arith.constant 0 : i32
    return %c0_i32, %arg0 : i32, i32
  }
  func.func @transform_2(%arg0: i32) -> (i32, i32) {
    %c0_i32 = arith.constant 0 : i32
    %c0_i32_0 = arith.constant 0 : i32
    return %c0_i32, %arg0 : i32, i32
  }
}

</mosaic_0001>

<bundles_post_ra>
// kernel: squeeze.1
= control target key start
LH: loop header
LB: loop body
LE: loop exit
PB: predicated region body
PF: predicated region fallthrough
CT: control target
= control target key end

     0   :  { %s149_s0 = inlined_call_operand.vmem [shape: f32[1024], index: 0, kind: input, shape index: {}]   ;;  %s150_s1 = inlined_call_operand.hbm [shape: f32[4,16,16], index: 1, kind: output, shape index: {}]  }
   0x1   :  { %v7_v0 = vld [vmem:[%s149_s0] sm:$0xff]  }
   0x2   :  { %2 = vsyncpa [#allocation1], 0  ;;  %s109_s0 = smov 112   ;;  %s110_s8 = smov 80   ;;  %vm4_vm0 = vcmask 130048  }
   0x3   :  { %8 = vrot.lane.b32.xlu0 %v7_v0, %s109_s0  ;;  %24 = vrot.lane.b32.xlu1 %v7_v0, %s110_s8  ;;  %s111_s9 = smov 48   ;;  %s112_s10 = smov 96   ;;  %5 = vst.msk [vmem:[#allocation0] ss:$8 sm:$0xf] %vm4_vm0, %v7_v0  }
   0x4   :  { %40 = vrot.lane.b32.xlu2 %v7_v0, %s111_s9  ;;  %s113_s11 = smov 64   ;;  %s114_s12 = smov 32   ;;  %6 = vst.msk [vmem:[#allocation0] ss:$8 sm:$0xf0] %vm4_vm0, %v7_v0  }
   0x5   :  { %s115_s13 = smov 16   ;;  %s116_s14 = smov [#allocation0]  }
   0x6   :  { %s66_s15 = sshll.u32 %s116_s14, 4  ;;  %s68_s1 = sshll.u32 %s150_s1, 4  ;;  %s67_s15 = int_to_ptr.vmem [resolvable:$true] %s66_s15  ;;  %s69_s1 = int_to_ptr.hbm [resolvable:$true] %s68_s1 }
   0xb   :  { %16 = vrot.lane.b32.xlu0 %v7_v0, %s112_s10  ;;  %32 = vrot.lane.b32.xlu1 %v7_v0, %s113_s11 }
   0xc   :  { %48 = vrot.lane.b32.xlu2 %v7_v0, %s114_s12 }
  0x13   :  { %56 = vrot.lane.b32.xlu0 %v7_v0, %s115_s13 }
  0x5e   :  { %v41_v1 = vpop.permute.xlu2 %40  }
  0x5f   :  { %44 = vst.msk [vmem:[#allocation0 + $0x5] ss:$8 sm:$0xf] %vm4_vm0, %v41_v1  }
  0x60   :  { %46 = vst.msk [vmem:[#allocation0 + $0x5] ss:$8 sm:$0xf0] %vm4_vm0, %v41_v1  }
  0x66   :  { %v49_v2 = vpop.permute.xlu2 %48  }
  0x67   :  { %52 = vst.msk [vmem:[#allocation0 + $0x6] ss:$8 sm:$0xf] %vm4_vm0, %v49_v2  }
  0x68   :  { %54 = vst.msk [vmem:[#allocation0 + $0x6] ss:$8 sm:$0xf0] %vm4_vm0, %v49_v2  }
  0x75   :  { %v9_v3 = vpop.permute.xlu0 %8   ;;  %v25_v4 = vpop.permute.xlu1 %24  }
  0x76   :  { %12 = vst.msk [vmem:[#allocation0 + $0x1] ss:$8 sm:$0xf] %vm4_vm0, %v9_v3  }
  0x77   :  { %14 = vst.msk [vmem:[#allocation0 + $0x1] ss:$8 sm:$0xf0] %vm4_vm0, %v9_v3  }
  0x78   :  { %28 = vst.msk [vmem:[#allocation0 + $0x3] ss:$8 sm:$0xf] %vm4_vm0, %v25_v4  }
  0x79   :  { %30 = vst.msk [vmem:[#allocation0 + $0x3] ss:$8 sm:$0xf0] %vm4_vm0, %v25_v4  }
  0x7d   :  { %v17_v5 = vpop.permute.xlu0 %16   ;;  %v33_v6 = vpop.permute.xlu1 %32  }
  0x7e   :  { %20 = vst.msk [vmem:[#allocation0 + $0x2] ss:$8 sm:$0xf] %vm4_vm0, %v17_v5  }
  0x7f   :  { %22 = vst.msk [vmem:[#allocation0 + $0x2] ss:$8 sm:$0xf0] %vm4_vm0, %v17_v5  }
  0x80   :  { %36 = vst.msk [vmem:[#allocation0 + $0x4] ss:$8 sm:$0xf] %vm4_vm0, %v33_v6  }
  0x81   :  { %38 = vst.msk [vmem:[#allocation0 + $0x4] ss:$8 sm:$0xf0] %vm4_vm0, %v33_v6  }
  0x85   :  { %v57_v7 = vpop.permute.xlu0 %56  }
  0x86   :  { %60 = vst.msk [vmem:[#allocation0 + $0x7] ss:$8 sm:$0xf] %vm4_vm0, %v57_v7  }
  0x87   :  { %62 = vst.msk [vmem:[#allocation0 + $0x7] ss:$8 sm:$0xf0] %vm4_vm0, %v57_v7  }
  0x88   :  { %71 = dma.vmem_to_hbm [thread:$0]  %s67_s15, 1024, %s69_s1, [#allocation1]  }
  0x89   :  { %107 = dma.done.wait [#allocation1], 1024  }
  0x8a   :  { %108 = vsyncadd [#allocation1], 4294966272 }
  0x8b   :  { %74 = vsyncpa [#allocation1], 1 }

// kernel: custom_loss.1
= control target key start
LH: loop header
LB: loop body
LE: loop exit
PB: predicated region body
PF: predicated region fallthrough
CT: control target
= control target key end

     0   :  { %vm40_vm0 = vcmask 1041408   ;;  %vm112_vm1 = vcmask 1040384   ;;  %vm114_vm2 = vcmask 1042434   ;;  %vm117_vm3 = vcmask 1044484   ;;  %s173_s0 = inlined_call_operand.vmem [shape: f32[2,1024], index: 0, kind: input, shape index: {}]   ;;  %s174_s1 = inlined_call_operand.vmem [shape: f32[2,1024], index: 1, kind: input, shape index: {}]   ;;  %s175_s2 = inlined_call_operand.vmem [shape: f32[1,1024], index: 2, kind: output, shape index: {}]  }
   0x1   :  { %v11_v0 = vld [vmem:[%s173_s0] sm:$0xff]  ;;  %v12_v2 = vld [vmem:[%s173_s0 + $0x8] sm:$0xff]  ;;  %vm119_vm4 = vcmask 1046534   ;;  %vm121_vm5 = vcmask 1045508   ;;  %vm123_vm6 = vcmask 1043456  }
   0x2   :  { %v13_v1 = vld [vmem:[%s174_s1] sm:$0xff]  ;;  %v14_v4 = vld [vmem:[%s174_s1 + $0x8] sm:$0xff] }
   0x3   :  { %v15_v3 = vsub.f32 %v11_v0, %v13_v1  ;;  %v16_v5 = vsub.f32 %v12_v2, %v14_v4 }
   0x5   :  { %v17_v6 = vmul.f32 %v15_v3, %v15_v3  ;;  %v18_v7 = vmul.f32 %v16_v5, %v16_v5 }
   0x7   :  { %21 = vst [vmem:[#allocation1] ss:$4 sm:$0xff] %v17_v6 }
   0x8   :  { %23 = vst [vmem:[#allocation1 + $0x20] ss:$4 sm:$0xff] %v18_v7 }
   0xe   :  { %v24_v8 = vld.sshfl [vmem:[#allocation1] sm:$0xff pattern:$0x73625140]  ;;  %v25_v9 = vld.sshfl [vmem:[#allocation1 + $0x8] sm:$0xff pattern:$0x73625140] }
   0xf   :  { %v26_v10 = vld.sshfl [vmem:[#allocation1 + $0x10] sm:$0xff pattern:$0x73625140]  ;;  %v27_v11 = vld.sshfl [vmem:[#allocation1 + $0x18] sm:$0xff pattern:$0x73625140] }
  0x10   :  { %v28_v12 = vld.sshfl [vmem:[#allocation1 + $0x20] sm:$0xff pattern:$0x73625140]  ;;  %v29_v13 = vld.sshfl [vmem:[#allocation1 + $0x28] sm:$0xff pattern:$0x73625140] }
  0x11   :  { %v30_v14 = vld.sshfl [vmem:[#allocation1 + $0x30] sm:$0xff pattern:$0x73625140]  ;;  %v31_v15 = vld.sshfl [vmem:[#allocation1 + $0x38] sm:$0xff pattern:$0x73625140] }
  0x12   :  { %v41_v16 = vsel %vm40_vm0, %v24_v8, 0.0  ;;  %v48_v17 = vsel %vm40_vm0, %v25_v9, 0.0  ;;  %v55_v18 = vsel %vm40_vm0, %v26_v10, 0.0  ;;  %v62_v19 = vsel %vm40_vm0, %v27_v11, 0.0 }
  0x13   :  { %v42_v20 = vrot.slane %v41_v16, 4  ;;  %v49_v21 = vrot.slane %v48_v17, 4  ;;  %v56_v22 = vrot.slane %v55_v18, 4  ;;  %v63_v23 = vrot.slane %v62_v19, 4 }
  0x14   :  { %v69_v24 = vsel %vm40_vm0, %v28_v12, 0.0  ;;  %v76_v25 = vsel %vm40_vm0, %v29_v13, 0.0  ;;  %v83_v26 = vsel %vm40_vm0, %v30_v14, 0.0  ;;  %v90_v27 = vsel %vm40_vm0, %v31_v15, 0.0 }
  0x15   :  { %v43_v28 = vadd.f32 %v42_v20, %v41_v16  ;;  %v50_v29 = vadd.f32 %v49_v21, %v48_v17  ;;  %v57_v30 = vadd.f32 %v56_v22, %v55_v18  ;;  %v64_v31 = vadd.f32 %v63_v23, %v62_v19 }
  0x16   :  { %v70_v32 = vrot.slane %v69_v24, 4  ;;  %v77_v33 = vrot.slane %v76_v25, 4  ;;  %v84_v34 = vrot.slane %v83_v26, 4  ;;  %v91_v35 = vrot.slane %v90_v27, 4 }
  0x17   :  { %v44_v36 = vrot.slane %v43_v28, 2  ;;  %v51_v37 = vrot.slane %v50_v29, 2  ;;  %v58_v38 = vrot.slane %v57_v30, 2  ;;  %v65_v39 = vrot.slane %v64_v31, 2 }
  0x18   :  { %v71_v40 = vadd.f32 %v70_v32, %v69_v24  ;;  %v78_v41 = vadd.f32 %v77_v33, %v76_v25  ;;  %v85_v42 = vadd.f32 %v84_v34, %v83_v26  ;;  %v92_v43 = vadd.f32 %v91_v35, %v90_v27 }
  0x19   :  { %v45_v44 = vadd.f32 %v44_v36, %v43_v28  ;;  %v52_v45 = vadd.f32 %v51_v37, %v50_v29  ;;  %v59_v46 = vadd.f32 %v58_v38, %v57_v30  ;;  %v66_v47 = vadd.f32 %v65_v39, %v64_v31 }
  0x1a   :  { %v72_v48 = vrot.slane %v71_v40, 2  ;;  %v79_v49 = vrot.slane %v78_v41, 2  ;;  %v86_v50 = vrot.slane %v85_v42, 2  ;;  %v93_v51 = vrot.slane %v92_v43, 2 }
  0x1b   :  { %v46_v52 = vrot.slane %v45_v44, 1  ;;  %v53_v53 = vrot.slane %v52_v45, 1  ;;  %v60_v54 = vrot.slane %v59_v46, 1  ;;  %v67_v55 = vrot.slane %v66_v47, 1 }
  0x1c   :  { %v73_v56 = vadd.f32 %v72_v48, %v71_v40  ;;  %v80_v57 = vadd.f32 %v79_v49, %v78_v41  ;;  %v87_v58 = vadd.f32 %v86_v50, %v85_v42  ;;  %v94_v59 = vadd.f32 %v93_v51, %v92_v43 }
  0x1d   :  { %v54_v60 = vadd.f32 %v53_v53, %v52_v45  ;;  %v61_v61 = vadd.f32 %v60_v54, %v59_v46  ;;  %v68_v62 = vadd.f32 %v67_v55, %v66_v47  ;;  %v47_v3 = vadd.f32 %v46_v52, %v45_v44 }
  0x1e   :  { %v74_v63 = vrot.slane %v73_v56, 1  ;;  %v81_v0 = vrot.slane %v80_v57, 1  ;;  %v88_v1 = vrot.slane %v87_v58, 1  ;;  %v95_v2 = vrot.slane %v94_v59, 1 }
  0x1f   :  { %v105_v4 = vrot.slane %v54_v60, 7  ;;  %v106_v5 = vrot.slane %v61_v61, 6  ;;  %v107_v6 = vrot.slane %v68_v62, 5 }
  0x20   :  { %v75_v7 = vadd.f32 %v74_v63, %v73_v56  ;;  %v82_v8 = vadd.f32 %v81_v0, %v80_v57  ;;  %v89_v9 = vadd.f32 %v88_v1, %v87_v58  ;;  %v96_v10 = vadd.f32 %v95_v2, %v94_v59 }
  0x21   :  { %v113_v11 = vsel %vm112_vm1, %v47_v3, %v105_v4  ;;  %v115_v12 = vsel %vm114_vm2, %v106_v5, %v107_v6 }
  0x22   :  { %v108_v13 = vrot.slane %v75_v7, 4  ;;  %v109_v14 = vrot.slane %v82_v8, 3  ;;  %v110_v15 = vrot.slane %v89_v9, 2  ;;  %v111_v16 = vrot.slane %v96_v10, 1 }
  0x23   :  { %v116_v17 = vsel %vm40_vm0, %v113_v11, %v115_v12 }
  0x24   :  { %v118_v18 = vsel %vm117_vm3, %v108_v13, %v109_v14  ;;  %v120_v19 = vsel %vm119_vm4, %v110_v15, %v111_v16 }
  0x25   :  { %v122_v20 = vsel %vm121_vm5, %v118_v18, %v120_v19 }
  0x26   :  { %v124_v21 = vsel %vm123_vm6, %v116_v17, %v122_v20 }
  0x27   :  { %126 = vst [vmem:[%s175_s2] sm:$0xff] %v124_v21 }

</bundles_post_ra>
